<compile_context>
chip_gen: v7x
topology: tpu7x:2x2x1
jax: 0.10.0
libtpu: 0.0.40
codegen_flags: <defaults>
</compile_context>

<pallas_src>
import jax
import jax.numpy as jnp
from jax.experimental import pallas as pl
from jax.experimental.pallas import tpu as pltpu


def _mlp_kernel(x_ref, w1_ref, b1_ref, w2_ref, b2_ref, w3_ref, b3_ref, o_ref):
    xT = x_ref[...]                                                   # (4, TB)
    # layer 1: Linear(4, 10) + ReLU          -> (10, TB), batch on lanes
    h1 = jnp.dot(w1_ref[...], xT, preferred_element_type=jnp.float32) + b1_ref[...]
    h1 = jnp.maximum(h1, 0.0)
    # layer 2: Linear(10, 5) + ReLU          -> (5, TB)
    h2 = jnp.dot(w2_ref[...], h1, preferred_element_type=jnp.float32) + b2_ref[...]
    h2 = jnp.maximum(h2, 0.0)
    # layer 3: Linear(5, 1) + sigmoid        -> (1, TB)
    z = jnp.dot(w3_ref[...], h2, preferred_element_type=jnp.float32) + b3_ref[...]
    # Stable sigmoid without a VALU divide: sigmoid(z) = 0.5*(tanh(z/2)+1)
    o_ref[...] = (0.5 * (jnp.tanh(0.5 * z) + 1.0)).astype(o_ref.dtype)


def prepare_params(p):
    """One-time prep (off the per-call path): weights stay in PyTorch (out, in)
    form; biases become (out, 1) columns so they broadcast over the lane axis."""
    return (p["w1"], p["b1"][:, None],
            p["w2"], p["b2"][:, None],
            p["w3"], p["b3"][:, None])


def _round_up(n, m):
    return ((n + m - 1) // m) * m


def iris_bcf_forward_feature_major(xT, prepared_params, *, tile_b=32 * 1024):
    """xT: (4, B) float32, feature-major. Returns (1, B) float32 probabilities."""
    w1, b1, w2, b2, w3, b3 = prepared_params
    B = xT.shape[1]

    if B <= 128:
        # Single block; lane dim equals the full array dim, so any B is legal.
        TB = B
    else:
        # Multiple of 128, capped at tile_b, and >= 2 grid steps so v7x's two
        # TensorCores both get work (harmless on single-TC v5e/v6e).
        TB = max(128, min(tile_b, _round_up(pl.cdiv(B, 2), 128)))

    grid = (pl.cdiv(B, TB),)   # no padding: final partial block is fine here

    x_spec = pl.BlockSpec((4, TB), lambda i: (0, i))
    out_spec = pl.BlockSpec((1, TB), lambda i: (0, i))

    def const_spec(a):
        # Full-array block, same block index every step -> VMEM-resident.
        return pl.BlockSpec(a.shape, lambda i: (0, 0))

    return pl.pallas_call(
        _mlp_kernel,
        out_shape=jax.ShapeDtypeStruct((1, B), jnp.float32),
        grid=grid,
        in_specs=[x_spec,
                  const_spec(w1), const_spec(b1),
                  const_spec(w2), const_spec(b2),
                  const_spec(w3), const_spec(b3)],
        out_specs=out_spec,
        compiler_params=pltpu.CompilerParams(
            dimension_semantics=("parallel",),
            vmem_limit_bytes=32 * 1024 * 1024),
    )(xT, w1, b1, w2, b2, w3, b3)


def iris_bcf_forward(x, prepared_params, *, tile_b=32 * 1024):
    """Convenience entry point matching the PyTorch module: x (B, 4) -> (B, 1).
    Does one transpose off the hot path; store data feature-major upstream to
    avoid it entirely."""
    B = x.shape[0]
    out_fm = iris_bcf_forward_feature_major(x.T, prepared_params, tile_b=tile_b)
    return jnp.reshape(out_fm, (B, 1))


def _init_params(key):
    """Deterministic init mimicking nn.Linear's U(-1/sqrt(fan_in), 1/sqrt(fan_in)),
    stored in PyTorch (out, in) / (out,) convention."""
    ks = jax.random.split(key, 6)

    def lin(kw, kb, fan_in, fan_out):
        bound = 1.0 / jnp.sqrt(float(fan_in))
        w = jax.random.uniform(kw, (fan_out, fan_in), jnp.float32, -bound, bound)
        b = jax.random.uniform(kb, (fan_out,), jnp.float32, -bound, bound)
        return w, b

    w1, b1 = lin(ks[0], ks[1], 4, 10)
    w2, b2 = lin(ks[2], ks[3], 10, 5)
    w3, b3 = lin(ks[4], ks[5], 5, 1)
    return {"w1": w1, "b1": b1, "w2": w2, "b2": b2, "w3": w3, "b3": b3}


def _reference(x, p):
    h = jnp.maximum(x @ p["w1"].T + p["b1"], 0.0)
    h = jnp.maximum(h @ p["w2"].T + p["b2"], 0.0)
    return jax.nn.sigmoid(h @ p["w3"].T + p["b3"])


if __name__ == "__main__":
    key = jax.random.PRNGKey(0)
    k_param, k_x = jax.random.split(key)
    params = _init_params(k_param)
    prepared = prepare_params(params)   # done once, off the per-call path

    batch = 256                         # small, but exercises the 2-step grid
    x = jax.random.normal(k_x, (batch, 4), jnp.float32)

    out = iris_bcf_forward(x, prepared)          # TB=128, grid=(2,)
    jax.block_until_ready(out)

    ref = _reference(x, params)
    assert out.shape == (batch, 1)
    assert jnp.allclose(out, ref, atol=1e-5, rtol=1e-5), \
        float(jnp.max(jnp.abs(out - ref)))
    print("KERNEL_OK")
</pallas_src>

<mosaic_0001>
module attributes {stable_mosaic.version = 11 : i64} {
  func.func @_mlp_kernel(%arg0: i32, %arg1: memref<4x128xf32, #tpu.memory_space<vmem>>, %arg2: memref<10x4xf32, #tpu.memory_space<vmem>>, %arg3: memref<10x1xf32, #tpu.memory_space<vmem>>, %arg4: memref<5x10xf32, #tpu.memory_space<vmem>>, %arg5: memref<5x1xf32, #tpu.memory_space<vmem>>, %arg6: memref<1x5xf32, #tpu.memory_space<vmem>>, %arg7: memref<1x1xf32, #tpu.memory_space<vmem>>, %arg8: memref<1x128xf32, #tpu.memory_space<vmem>>) attributes {dimension_semantics = [#tpu.dimension_semantics<parallel>], iteration_bounds = array<i64: 2>, scalar_prefetch = 0 : i64, scratch_operands = 0 : i64, tpu.core_type = #tpu.core_type<tc>, window_params = [{transform_indices = @transform_0, window_bounds = array<i64: 4, 128>}, {pipeline_mode = #tpu.pipeline_mode<synchronous>, transform_indices = @transform_1, window_bounds = array<i64: 10, 4>}, {pipeline_mode = #tpu.pipeline_mode<synchronous>, transform_indices = @transform_2, window_bounds = array<i64: 10, 1>}, {pipeline_mode = #tpu.pipeline_mode<synchronous>, transform_indices = @transform_3, window_bounds = array<i64: 5, 10>}, {pipeline_mode = #tpu.pipeline_mode<synchronous>, transform_indices = @transform_4, window_bounds = array<i64: 5, 1>}, {pipeline_mode = #tpu.pipeline_mode<synchronous>, transform_indices = @transform_5, window_bounds = array<i64: 1, 5>}, {pipeline_mode = #tpu.pipeline_mode<synchronous>, transform_indices = @transform_6, window_bounds = array<i64: 1, 1>}, {transform_indices = @transform_7, window_bounds = array<i64: 1, 128>}]} {
    %c0 = arith.constant 0 : index
    %c0_0 = arith.constant 0 : index
    %0 = vector.load %arg1[%c0, %c0_0] : memref<4x128xf32, #tpu.memory_space<vmem>>, vector<4x128xf32>
    %c0_1 = arith.constant 0 : index
    %c0_2 = arith.constant 0 : index
    %1 = vector.load %arg2[%c0_1, %c0_2] : memref<10x4xf32, #tpu.memory_space<vmem>>, vector<10x4xf32>
    %cst = arith.constant dense<0.000000e+00> : vector<10x128xf32>
    %2 = tpu.matmul %1, %0, %cst {dimension_numbers = #tpu.dot_dimension_numbers<[1], [0], [0], [1], [0, 0, 1, 1], [], []>} : vector<10x4xf32>, vector<4x128xf32>, vector<10x128xf32> -> vector<10x128xf32>
    %c0_3 = arith.constant 0 : index
    %c0_4 = arith.constant 0 : index
    %3 = vector.load %arg3[%c0_3, %c0_4] : memref<10x1xf32, #tpu.memory_space<vmem>>, vector<10x1xf32>
    %4 = vector.broadcast %3 : vector<10x1xf32> to vector<10x128xf32>
    %5 = arith.addf %2, %4 : vector<10x128xf32>
    %cst_5 = arith.constant 0.000000e+00 : f32
    %6 = vector.broadcast %cst_5 : f32 to vector<10x128xf32>
    %7 = arith.maximumf %5, %6 : vector<10x128xf32>
    %c0_6 = arith.constant 0 : index
    %c0_7 = arith.constant 0 : index
    %8 = vector.load %arg4[%c0_6, %c0_7] : memref<5x10xf32, #tpu.memory_space<vmem>>, vector<5x10xf32>
    %cst_8 = arith.constant dense<0.000000e+00> : vector<5x128xf32>
    %9 = tpu.matmul %8, %7, %cst_8 {dimension_numbers = #tpu.dot_dimension_numbers<[1], [0], [0], [1], [0, 0, 1, 1], [], []>} : vector<5x10xf32>, vector<10x128xf32>, vector<5x128xf32> -> vector<5x128xf32>
    %c0_9 = arith.constant 0 : index
    %c0_10 = arith.constant 0 : index
    %10 = vector.load %arg5[%c0_9, %c0_10] : memref<5x1xf32, #tpu.memory_space<vmem>>, vector<5x1xf32>
    %11 = vector.broadcast %10 : vector<5x1xf32> to vector<5x128xf32>
    %12 = arith.addf %9, %11 : vector<5x128xf32>
    %cst_11 = arith.constant 0.000000e+00 : f32
    %13 = vector.broadcast %cst_11 : f32 to vector<5x128xf32>
    %14 = arith.maximumf %12, %13 : vector<5x128xf32>
    %c0_12 = arith.constant 0 : index
    %c0_13 = arith.constant 0 : index
    %15 = vector.load %arg6[%c0_12, %c0_13] : memref<1x5xf32, #tpu.memory_space<vmem>>, vector<1x5xf32>
    %cst_14 = arith.constant dense<0.000000e+00> : vector<1x128xf32>
    %16 = tpu.matmul %15, %14, %cst_14 {dimension_numbers = #tpu.dot_dimension_numbers<[1], [0], [0], [1], [0, 0, 1, 1], [], []>} : vector<1x5xf32>, vector<5x128xf32>, vector<1x128xf32> -> vector<1x128xf32>
    %c0_15 = arith.constant 0 : index
    %c0_16 = arith.constant 0 : index
    %17 = vector.load %arg7[%c0_15, %c0_16] : memref<1x1xf32, #tpu.memory_space<vmem>>, vector<1x1xf32>
    %18 = vector.broadcast %17 : vector<1x1xf32> to vector<1x128xf32>
    %19 = arith.addf %16, %18 : vector<1x128xf32>
    %cst_17 = arith.constant 5.000000e-01 : f32
    %20 = vector.broadcast %cst_17 : f32 to vector<1x128xf32>
    %21 = arith.mulf %20, %19 : vector<1x128xf32>
    %22 = math.tanh %21 : vector<1x128xf32>
    %cst_18 = arith.constant 1.000000e+00 : f32
    %23 = vector.broadcast %cst_18 : f32 to vector<1x128xf32>
    %24 = arith.addf %22, %23 : vector<1x128xf32>
    %cst_19 = arith.constant 5.000000e-01 : f32
    %25 = vector.broadcast %cst_19 : f32 to vector<1x128xf32>
    %26 = arith.mulf %25, %24 : vector<1x128xf32>
    %c0_20 = arith.constant 0 : index
    %c0_21 = arith.constant 0 : index
    %27 = vector.load %arg8[%c0_20, %c0_21] : memref<1x128xf32, #tpu.memory_space<vmem>>, vector<1x128xf32>
    tpu.vector_store %arg8[%c0_20, %c0_21], %26 {strides = array<i32>} : memref<1x128xf32, #tpu.memory_space<vmem>>, vector<1x128xf32>,
    return
  }
  func.func @transform_0(%arg0: i32) -> (i32, i32) {
    %c0_i32 = arith.constant 0 : i32
    %c0_i32_0 = arith.constant 0 : i32
    return %c0_i32, %arg0 : i32, i32
  }
  func.func @transform_1(%arg0: i32) -> (i32, i32) {
    %c0_i32 = arith.constant 0 : i32
    %c0_i32_0 = arith.constant 0 : i32
    %c0_i32_1 = arith.constant 0 : i32
    return %c0_i32, %c0_i32_0 : i32, i32
  }
  func.func @transform_2(%arg0: i32) -> (i32, i32) {
    %c0_i32 = arith.constant 0 : i32
    %c0_i32_0 = arith.constant 0 : i32
    %c0_i32_1 = arith.constant 0 : i32
    return %c0_i32, %c0_i32_0 : i32, i32
  }
  func.func @transform_3(%arg0: i32) -> (i32, i32) {
    %c0_i32 = arith.constant 0 : i32
    %c0_i32_0 = arith.constant 0 : i32
    %c0_i32_1 = arith.constant 0 : i32
    return %c0_i32, %c0_i32_0 : i32, i32
  }
  func.func @transform_4(%arg0: i32) -> (i32, i32) {
    %c0_i32 = arith.constant 0 : i32
    %c0_i32_0 = arith.constant 0 : i32
    %c0_i32_1 = arith.constant 0 : i32
    return %c0_i32, %c0_i32_0 : i32, i32
  }
  func.func @transform_5(%arg0: i32) -> (i32, i32) {
    %c0_i32 = arith.constant 0 : i32
    %c0_i32_0 = arith.constant 0 : i32
    %c0_i32_1 = arith.constant 0 : i32
    return %c0_i32, %c0_i32_0 : i32, i32
  }
  func.func @transform_6(%arg0: i32) -> (i32, i32) {
    %c0_i32 = arith.constant 0 : i32
    %c0_i32_0 = arith.constant 0 : i32
    %c0_i32_1 = arith.constant 0 : i32
    return %c0_i32, %c0_i32_0 : i32, i32
  }
  func.func @transform_7(%arg0: i32) -> (i32, i32) {
    %c0_i32 = arith.constant 0 : i32
    %c0_i32_0 = arith.constant 0 : i32
    return %c0_i32, %arg0 : i32, i32
  }
}

</mosaic_0001>

<bundles_post_ra>
// kernel: tpu_custom_call.1
= control target key start
LH: loop header
LB: loop body
LE: loop exit
PB: predicated region body
PF: predicated region fallthrough
CT: control target
= control target key end

     0   :  { %s954_s0 = inlined_call_operand.vmem [shape: f32[4,256], index: 0, kind: input, shape index: {}]   ;;  %s955_s1 = inlined_call_operand.vmem [shape: f32[10,4], index: 1, kind: input, shape index: {}]   ;;  %s956_s2 = inlined_call_operand.vmem [shape: f32[10,1], index: 2, kind: input, shape index: {}]   ;;  %s957_s3 = inlined_call_operand.vmem [shape: f32[5,10], index: 3, kind: input, shape index: {}]   ;;  %s958_s4 = inlined_call_operand.vmem [shape: f32[5,1], index: 4, kind: input, shape index: {}]   ;;  %s959_s5 = inlined_call_operand.vmem [shape: f32[1,5], index: 5, kind: input, shape index: {}]   ;;  %s960_s6 = inlined_call_operand.<no memory space> [shape: f32[1,1], index: 6, kind: input, shape index: {}]   ;;  %s961_s7 = inlined_call_operand.hbm [shape: f32[1,256], index: 7, kind: output, shape index: {}]  }
   0x1   :  { %v12_v0 = vstv %s960_s6 }
   0x2   :  { %13 = vst [vmem:[#allocation2] sm:$0x1] %v12_v0 }
   0x3   :  { %14 = vsyncpa [#allocation4], 0 }
   0x4   :  { %16 = vsyncpa [#allocation4 + $0x1], 0  ;;  %s831_s26 = smov 0   ;;  %s833_s27 = smov 0  }
   0x5   :  { %s835_s28 = smov 0   ;;  %s837_s29 = smov 0  }
   0x6 LB: > { %s852_s6 = sadd.s32 4294967295, %s780_s29   ;;  %s626_s30 = sadd.s32 4294967294, %s780_s29   ;;  %s780_s29 = sphi %s837_s29, %s967_s29   ;;  %s776_s28 = sphi %s835_s28, %s966_s28   ;;  %s772_s27 = sphi %s833_s27, %s965_s27   ;;  %s768_s26 = sphi %s831_s26, %s964_s26  }
   0x7   : > { %s856_s8 = sadd.s32 1, %s780_s29   ;;  %s181_s9 = sadd.s32 1, %s776_s28 }
   0x8   : > { %s178_s10 = ssub.s32 %s780_s29, %s856_s8  ;;  %p191_p0 = scmp.ne.s32.totalorder %s776_s28, %s772_s27 }
   0x9   : > { %p179_p1 = scmp.eq.s32.totalorder %s178_s10, 0  ;;  %p192_p2 = scmp.eq.s32.totalorder %s852_s6, 1 }
   0xa   : > { %p197_p3 = scmp.ne.s32.totalorder %s772_s27, %s768_s26  ;;  %p198_p4 = scmp.eq.s32.totalorder %s626_s30, 1 }
   0xb   : > { %s867_s11 = scalar_select %p179_p1, %s776_s28, %s181_s9  }
   0xc   : > { %p869_p5 = por %p192_p2, %p191_p0  ;;  %p873_p6 = por %p198_p4, %p197_p3 }
   0xd   : > { %p629_p7 = scmp.ge.s32.totalorder %s780_s29, 1  ;;  %p241_p8 = scmp.lt.s32.totalorder %s780_s29, 3 }
   0xf   : > { %p242_p9 = pnand %p629_p7, %p241_p8 }
  0x10   : > { %p271_p10 = scmp.lt.s32.totalorder (!%p242_p9), %s852_s6, 1  ;;  %v276_v1 = vld [vmem:[%s955_s1] sm:$0xff] (!%p242_p9)  ;;  %vm290_vm0 = vcmask (!%p242_p9), 31744   ;;  %v782_v3 = vmov (!%p242_p9), 0   ;;  %vm297_vm1 = vcmask (!%p242_p9), 1043456   ;;  %v783_v7 = vmov (!%p242_p9), 0.0|0.0  }
  0x11   : > { %245 = sbr.rel (%p242_p9) target bundleno = 715 (0x2cb), region = 48  ;;  %651 = vmatprep.mubr.msk.f32.mxu0 (!%p242_p9), %vm290_vm0, %v276_v1  ;;  %v278_v2 = vld [vmem:[%s956_s2] sm:$0xff] (!%p242_p9)  ;;  %714 = vset.pattern.permute.xlu0 (!%p242_p9), %v782_v3  ;;  %v279_v4 = vld [vmem:[%s956_s2 + $0x8] sm:$0x3] (!%p242_p9)  ;;  %vm784_vm2 = vmmov (!%p242_p9), 0   ;;  %v785_v8 = vmov (!%p242_p9), 0.0   ;;  %v471_v27 = vlaneseq (!%p242_p9) }
  0x12   : > { %715 = vset.pattern.permute.xlu1 (!%p242_p9), %v782_v3  ;;  %282 = vperm.xlu0 (!%p242_p9), %714, %v278_v2   ;;  %v277_v6 = vld [vmem:[%s955_s1 + $0x8] sm:$0x3] (!%p242_p9)  ;;  %v379_v9 = vld [vmem:[%s958_s4] sm:$0x1f] (!%p242_p9)  ;;  %vm389_vm3 = vcmask (!%p242_p9), 1041408   ;;  %vm786_vm4 = vmmov (!%p242_p9), 1  }
  0x13   : > { %666 = vmatprep.subr.bf16.mxu1 (!%p242_p9), %v783_v7  ;;  %658 = vmatprep.mubr.msk.f32.mxu1 (!%p242_p9), %vm784_vm2, %v785_v8  ;;  %v465_v10 = vld [vmem:[#allocation2] sm:$0x1] (!%p242_p9)  ;;  %vm668_vm5 = vmpackc.low (!%p242_p9), %vm389_vm3, %vm786_vm4  ;;  %vm385_vm6 = vcmask (!%p242_p9), 80896   ;;  %vm479_vm7 = vcmask (!%p242_p9), 1044480   ;;  %vm475_vm8 = vcmask (!%p242_p9), 39936   ;;  %v472_v28 = vshrl.u32 (!%p242_p9), %v471_v27, 7 }
  0x14   : > { %382 = vperm.xlu1 (!%p242_p9), %715, %v379_v9   ;;  %v378_v20 = vld [vmem:[%s957_s3] sm:$0x1f] (!%p242_p9) }
  0x15   : > { %v464_v26 = vld [vmem:[%s959_s5] sm:$0x1] (!%p242_p9)  ;;  %v473_v29 = vsub.s32 (!%p242_p9), 0, %v472_v28 }
  0x16   : > { %287 = vperm.xlu0 (!%p242_p9), %714, %v279_v4  }
  0x18   : > { %s272_s18 = scalar_select %p271_p10, %s852_s6, 1  ;;  %468 = vperm.xlu1 %715, %v465_v10  }
  0x1a   : > { %s630_s19 = sshll.u32 %s272_s18, 2  ;;  %s269_s18 = sand.u32 1, %s772_s27  }
  0x1b   : > { %s274_s24 = scalar_lea.vmem %s954_s0, %s630_s19  ;;  %s638_s19 = sshll.u32 %s852_s6, 4 }
  0x1c   : > { %v275_v5 = vld [vmem:[%s274_s24] sm:$0xf]  ;;  %s270_s20 = scalar_lea.vmem [#allocation3], %s269_s18  ;;  %s912_s24 = scalar_lea.hbm %s961_s7, %s638_s19 }
  0x1d   : > { %649 = vmatprep.subr.msk.mxu0 %vm297_vm1, %v275_v5  ;;  %s571_s21 = sshll.u32 %s270_s20, 4  ;;  %s559_s25 = scalar_lea.sflag [#allocation4], %s269_s18  ;;  %s914_s21 = int_to_ptr.vmem [resolvable:$true] %s571_s21 }
  0x1e   : > { %650 = vmatpush3.msk.msra.mxu0 %vm297_vm1, %v275_v5  ;;  %s718_s30 = scalar_lea.vmem %s914_s21, 16  ;;  %s787_s6 = smov [#allocation3]  }
  0x1f   : > { %652 = vmatmul.mubr.msk.f32.vlgmr.msra.gmra.mrb[0].mxu0 %vm290_vm0, %v277_v6  ;;  %661 = vmatprep.subr.mxu0 %v785_v8  ;;  %p719_p11 = scmp.ne.s32.totalorder %s914_s21, %s718_s30  ;;  %s722_s9 = sshll.u32 %s787_s6, 4  ;;  %s723_s9 = int_to_ptr.vmem [resolvable:$false] %s722_s9 }
  0x20   : > { %663 = vmatprep.mubr.msk.f32.mxu0 %vm784_vm2, %v785_v8  ;;  %s724_s10 = scalar_lea.vmem %s723_s9, 32  ;;  %p725_p0 = scmp.lt.s32.totalorder %s914_s21, %s723_s9 }
  0x21   : > { %p720_p12 = pnand %p719_p11, %p869_p5  ;;  %p726_p1 = scmp.lt.s32.totalorder %s724_s10, %s718_s30 }
  0x23   : > { %p721_p13 = pneg %p720_p12  ;;  %p727_p2 = por %p726_p1, %p725_p0 }
  0x25   : > { %p728_p3 = pnand %p727_p2, %p721_p13 }
  0x91   : > { %v283_v11 = vpop.permute.xlu0 %282 }
  0x93   : > { %v383_v21 = vpop.permute.xlu1 %382 }
  0x95   : > { %v288_v12 = vpop.permute.xlu0 %287 }
  0x97   : > { %v469_v30 = vpop.permute.xlu1 %468 }
  0x98   : > { %v474_v31 = vrot.slane %v469_v30, %v473_v29 }
  0xf2   : > { %v653_v13 = vpop.f32.mrb[0].mxu0 }
  0xf3   : > { %v373_v14 = vadd.f32 %v653_v13, %v288_v12  ;;  %v367_v15 = vpop.f32.mrb[1].mxu0 }
  0xf4   : > { %v368_v16 = vadd.f32 %v367_v15, %v283_v11 }
  0xf5   : > { %v377_v17 = vmax.f32 %v373_v14, 0.0 }
  0xf6   : > { %v376_v18 = vmax.f32 %v368_v16, 0.0 }
  0xf8   : > { %v667_v19 = vpack.c.bf16 %v377_v17, %v376_v18 }
  0xfa   : > { %669 = vmatpush3.bf16.msk.msra.mxu1 %vm668_vm5, %v667_v19 }
  0xfd   : > { %659 = vmatmul.mubr.msk.f32.vlgmr.msra.gmra.mrb[0].mxu1 %vm385_vm6, %v378_v20 }
 0x1d0   : > { %v459_v22 = vpop.f32.mrb[0].mxu1 }
 0x1d1   : > { %v460_v23 = vadd.f32 %v459_v22, %v383_v21  ;;  %v660_v24 = vpop.f32.mrb[1].mxu1 }
 0x1d3   : > { %v463_v25 = vmax.f32 %v460_v23, 0.0 }
 0x1d5   : > { %662 = vmatpush3.msk.msra.mxu0 %vm479_vm7, %v463_v25 }
 0x1d6   : > { %664 = vmatmul.mubr.msk.f32.vlgmr.msra.gmra.mrb[2].mxu0 %vm475_vm8, %v464_v26 }
 0x2a9   : > { %v549_v32 = vpop.f32.mrb[2].mxu0 }
 0x2aa   : > { %v550_v33 = vadd.f32 %v549_v32, %v474_v31  ;;  %v665_v34 = vpop.f32.mrb[3].mxu0 }
 0x2ac   : > { %v553_v35 = vmul.f32 0.5, %v550_v33 }
 0x2ae   : > { %716 = vtanh.f32 %v553_v35 }
 0x2b8   : > { %v717_v36 = vpop.eup %716 }
 0x2b9   : > { %v555_v37 = vadd.f32 1.0, %v717_v36 }
 0x2bb   : > { %v556_v38 = vmul.f32 0.5, %v555_v37 }
 0x2bd   : > { %557 = vst [vmem:[%s270_s20] sm:$0x1] %v556_v38 }
 0x2be   : > { %731 = shalt.err (!%p728_p3)
}
 0x2bf   : > { %s732_s14 = scalar_lea.hbm %s912_s24, 16  ;;  %s736_s17 = scalar_lea.hbm %s961_s7, 32 }
 0x2c0   : > { %p733_p4 = scmp.ne.s32.totalorder %s912_s24, %s732_s14  ;;  %p737_p9 = scmp.lt.u32.totalorder %s912_s24, %s961_s7 }
 0x2c1   : > { %p738_p10 = scmp.lt.u32.totalorder %s736_s17, %s732_s14  ;;  %p740_p12 = scmp.lt.u32.totalorder %s732_s14, %s912_s24 }
 0x2c2   : > { %p734_p7 = pnand %p733_p4, %p869_p5 }
 0x2c3   : > { %p739_p11 = por %p738_p10, %p737_p9 }
 0x2c4   : > { %p735_p8 = pneg %p734_p7 }
 0x2c5   : > { %p741_p13 = por %p740_p12, %p739_p11 }
 0x2c7   : > { %p742_p0 = pnand %p741_p13, %p735_p8 }
 0x2c9   : > { %745 = shalt.err (!%p742_p0)
}
 0x2ca   : > { %670 = dma.vmem_to_hbm [thread:$0]  (%p869_p5), %s914_s21, 16, %s912_s24, %s559_s25  }
 0x2cb PF: > { %p676_p1 = scmp.ge.s32.totalorder %s780_s29, 2  ;;  %s583_s20 = sand.u32 1, %s768_s26  }
 0x2cc   : > { %s584_s22 = scalar_lea.sflag [#allocation4], %s583_s20 }
 0x2cd   : > { %p673_p2 = pnand %p676_p1, %p873_p6 }
 0x2cf   : > { %763 = dma.done.wait (!%p673_p2), %s584_s22, 16  }
 0x2d0   : > { %765 = vsyncadd (!%p673_p2), %s584_s22, 4294967280  ;;  %p19_p3 = scmp.ge.s32.totalorder %s856_s8, 4   ;;  %s964_s26 = smov %s772_s27 }
 0x2d1   : > { %s965_s27 = smov %s776_s28  ;;  %s966_s28 = smov %s867_s11 }
 0x2d2   : > { %s967_s29 = smov %s856_s8  ;;  %21 = sbr.rel (!%p19_p3) target bundleno = 6 (0x6), region = 83 }
 0x2d9   :  { %588 = vsyncpa [#allocation4], 1 }
 0x2da   :  { %590 = vsyncpa [#allocation4 + $0x1], 1 }

</bundles_post_ra>
